<compile_context>
chip_gen: v6e
topology: v6e:2x2x1
jax: 0.10.0
libtpu: 0.0.40
codegen_flags: <defaults>
</compile_context>

<pallas_src>
import jax
import jax.numpy as jnp
from jax.experimental import pallas as pl
from jax.experimental.pallas import tpu as pltpu


def _video_encoder_kernel(x_ref, w_ref, pe_ref, mask_ref, out_ref):
    # x_ref:    [TT, d0]  activation tile (batch dim squeezed away)
    # w_ref:    [d0, d]   Linear weight, pre-transposed; resident across grid
    # pe_ref:   [TT, d]   positional-embedding tile with the Linear bias folded in
    # mask_ref: [TT, 1]   per-token mask, broadcast over the feature lanes
    # out_ref:  [TT, d]
    lin = jnp.dot(x_ref[...], w_ref[...], preferred_element_type=jnp.float32)
    lin = lin + pe_ref[...].astype(jnp.float32)
    out_ref[...] = (lin * mask_ref[...].astype(jnp.float32)).astype(out_ref.dtype)


def _pick_time_tile(T: int) -> int:
    # Largest row tile <= 512 that divides T: a per-step working set of a few
    # MiB streams at ~85% of HBM roofline (vs ~29% for 128-row tiles).
    for tt in (512, 256, 128, 64, 32, 16, 8):
        if T % tt == 0:
            return tt
    return T  # tiny / odd T: single full-length tile (full-dim exception)


def video_encoder(video_features, video_mask, w_t, b, pos_emb, *, time_tile=None):
    """(video_features @ W.T + b + pos_emb) * mask  ==  Linear*mask + Embedding*mask."""
    B, T, d0 = video_features.shape
    d = w_t.shape[1]

    tt = _pick_time_tile(T) if time_tile is None else time_tile
    assert T % tt == 0, f"time_tile={tt} must divide T={T}"
    nt = T // tt

    # Fold the Linear bias into the positional embedding (one-time weight
    # precompute done by XLA outside the kernel).
    pe_plus_b = (pos_emb.astype(jnp.float32) + b.astype(jnp.float32)).astype(pos_emb.dtype)

    return pl.pallas_call(
        _video_encoder_kernel,
        out_shape=jax.ShapeDtypeStruct((B, T, d), video_features.dtype),
        grid_spec=pltpu.PrefetchScalarGridSpec(
            num_scalar_prefetch=0,
            grid=(nt, B),  # batch innermost -> pe / w tiles never re-DMAed
            in_specs=[
                # activations: streamed tile per (t, b) step
                pl.BlockSpec((None, tt, d0), lambda t, b: (b, t, 0)),
                # weight: constant block index -> fetched once, stays resident
                pl.BlockSpec((d0, d), lambda t, b: (0, 0)),
                # pos-emb (+bias): depends only on t -> reused across the batch loop
                pl.BlockSpec((tt, d), lambda t, b: (t, 0)),
                # mask: single lane, broadcast over features inside the kernel
                pl.BlockSpec((None, tt, 1), lambda t, b: (b, t, 0)),
            ],
            out_specs=pl.BlockSpec((None, tt, d), lambda t, b: (b, t, 0)),
        ),
        compiler_params=pltpu.CompilerParams(
            # No reduction axis: both grid axes are parallel so v7x's two
            # TensorCores split the mem-bound streaming work.
            dimension_semantics=("parallel", "parallel"),
            # Explicit headroom; safe on v5e/v6e/v7x and large enough for
            # double-buffered production tiles (TT=512, d0=1024, d=512 f32).
            vmem_limit_bytes=32 * 1024 * 1024,
        ),
    )(video_features, w_t, pe_plus_b, video_mask)


def reference(video_features, video_mask, w_t, b, pos_emb):
    lin = jnp.einsum("btk,kd->btd", video_features, w_t,
                     precision=jax.lax.Precision.HIGHEST) + b[None, None, :]
    x = lin * video_mask
    p = pos_emb[None, :, :] * video_mask
    return x + p


if __name__ == "__main__":
    # Small but lane-aligned shapes consistent with the module
    # (module defaults are T=64, d=512, d0=1024).
    B, T, d0, d = 2, 128, 256, 128
    key = jax.random.PRNGKey(0)
    k1, k2, k3, k4, k5 = jax.random.split(key, 5)

    video_features = jax.random.normal(k1, (B, T, d0), dtype=jnp.float32)
    video_mask = (jax.random.uniform(k2, (B, T, 1)) > 0.3).astype(jnp.float32)

    # nn.Linear-style uniform init, nn.Embedding-style normal init.
    bound = 1.0 / (d0 ** 0.5)
    w = jax.random.uniform(k3, (d, d0), minval=-bound, maxval=bound,
                           dtype=jnp.float32)           # PyTorch [out, in]
    b = jax.random.uniform(k4, (d,), minval=-bound, maxval=bound,
                           dtype=jnp.float32)
    pos_emb = jax.random.normal(k5, (T, d), dtype=jnp.float32)

    w_t = w.T  # [d0, d] so the kernel computes x @ W.T directly

    # time_tile=64 -> grid=(2, 2): exercises the pipelined multi-step grid.
    out = video_encoder(video_features, video_mask, w_t, b, pos_emb, time_tile=64)
    out = jax.block_until_ready(out)

    ref = reference(video_features, video_mask, w_t, b, pos_emb)
    assert out.shape == (B, T, d)
    assert jnp.allclose(out, ref, atol=1e-4, rtol=1e-4), "mismatch vs reference"

    print("KERNEL_OK")
</pallas_src>

<mosaic_0001>
module attributes {stable_mosaic.version = 11 : i64} {
  func.func @_video_encoder_kernel(%arg0: i32, %arg1: i32, %arg2: memref<1x64x256xf32, #tpu.memory_space<vmem>>, %arg3: memref<256x128xf32, #tpu.memory_space<vmem>>, %arg4: memref<64x128xf32, #tpu.memory_space<vmem>>, %arg5: memref<1x64x1xf32, #tpu.memory_space<vmem>>, %arg6: memref<1x64x128xf32, #tpu.memory_space<vmem>>) attributes {dimension_semantics = [#tpu.dimension_semantics<parallel>, #tpu.dimension_semantics<parallel>], iteration_bounds = array<i64: 2, 2>, scalar_prefetch = 0 : i64, scratch_operands = 0 : i64, tpu.core_type = #tpu.core_type<tc>, window_params = [{transform_indices = @transform_0, window_bounds = array<i64: 1, 64, 256>}, {pipeline_mode = #tpu.pipeline_mode<synchronous>, transform_indices = @transform_1, window_bounds = array<i64: 256, 128>}, {transform_indices = @transform_2, window_bounds = array<i64: 64, 128>}, {transform_indices = @transform_3, window_bounds = array<i64: 1, 64, 1>}, {transform_indices = @transform_4, window_bounds = array<i64: 1, 64, 128>}]} {
    %c0 = arith.constant 0 : index
    %c0_0 = arith.constant 0 : index
    %c0_1 = arith.constant 0 : index
    %0 = vector.load %arg2[%c0, %c0_0, %c0_1] : memref<1x64x256xf32, #tpu.memory_space<vmem>>, vector<1x64x256xf32>
    %1 = vector.shape_cast %0 : vector<1x64x256xf32> to vector<64x256xf32>
    %c0_2 = arith.constant 0 : index
    %c0_3 = arith.constant 0 : index
    %2 = vector.load %arg3[%c0_2, %c0_3] : memref<256x128xf32, #tpu.memory_space<vmem>>, vector<256x128xf32>
    %cst = arith.constant dense<0.000000e+00> : vector<64x128xf32>
    %3 = tpu.matmul %1, %2, %cst {dimension_numbers = #tpu.dot_dimension_numbers<[1], [0], [0], [1], [0, 0, 1, 1], [], []>} : vector<64x256xf32>, vector<256x128xf32>, vector<64x128xf32> -> vector<64x128xf32>
    %c0_4 = arith.constant 0 : index
    %c0_5 = arith.constant 0 : index
    %4 = vector.load %arg4[%c0_4, %c0_5] : memref<64x128xf32, #tpu.memory_space<vmem>>, vector<64x128xf32>
    %5 = arith.addf %3, %4 : vector<64x128xf32>
    %c0_6 = arith.constant 0 : index
    %c0_7 = arith.constant 0 : index
    %c0_8 = arith.constant 0 : index
    %6 = vector.load %arg5[%c0_6, %c0_7, %c0_8] : memref<1x64x1xf32, #tpu.memory_space<vmem>>, vector<1x64x1xf32>
    %7 = vector.shape_cast %6 : vector<1x64x1xf32> to vector<64x1xf32>
    %8 = vector.broadcast %7 : vector<64x1xf32> to vector<64x128xf32>
    %9 = arith.mulf %5, %8 : vector<64x128xf32>
    %c0_9 = arith.constant 0 : index
    %c0_10 = arith.constant 0 : index
    %c0_11 = arith.constant 0 : index
    %10 = vector.load %arg6[%c0_9, %c0_10, %c0_11] : memref<1x64x128xf32, #tpu.memory_space<vmem>>, vector<1x64x128xf32>
    %11 = vector.shape_cast %10 : vector<1x64x128xf32> to vector<64x128xf32>
    %12 = vector.shape_cast %9 : vector<64x128xf32> to vector<1x64x128xf32>
    tpu.vector_store %arg6[%c0_9, %c0_10, %c0_11], %12 {strides = array<i32>} : memref<1x64x128xf32, #tpu.memory_space<vmem>>, vector<1x64x128xf32>,
    return
  }
  func.func @transform_0(%arg0: i32, %arg1: i32) -> (i32, i32, i32) {
    %c0_i32 = arith.constant 0 : i32
    %c0_i32_0 = arith.constant 0 : i32
    return %arg1, %arg0, %c0_i32 : i32, i32, i32
  }
  func.func @transform_1(%arg0: i32, %arg1: i32) -> (i32, i32) {
    %c0_i32 = arith.constant 0 : i32
    %c0_i32_0 = arith.constant 0 : i32
    %c0_i32_1 = arith.constant 0 : i32
    return %c0_i32, %c0_i32_0 : i32, i32
  }
  func.func @transform_2(%arg0: i32, %arg1: i32) -> (i32, i32) {
    %c0_i32 = arith.constant 0 : i32
    %c0_i32_0 = arith.constant 0 : i32
    return %arg0, %c0_i32 : i32, i32
  }
  func.func @transform_3(%arg0: i32, %arg1: i32) -> (i32, i32, i32) {
    %c0_i32 = arith.constant 0 : i32
    %c0_i32_0 = arith.constant 0 : i32
    return %arg1, %arg0, %c0_i32 : i32, i32, i32
  }
  func.func @transform_4(%arg0: i32, %arg1: i32) -> (i32, i32, i32) {
    %c0_i32 = arith.constant 0 : i32
    %c0_i32_0 = arith.constant 0 : i32
    return %arg1, %arg0, %c0_i32 : i32, i32, i32
  }
}

</mosaic_0001>

<bundles_post_ra>
// kernel: tpu_custom_call.1
= control target key start
LH: loop header
LB: loop body
LE: loop exit
PB: predicated region body
PF: predicated region fallthrough
CT: control target
= control target key end

     0   :  { %s1544_s0 = inlined_call_operand.hbm [shape: f32[2,128,256], index: 0, kind: input, shape index: {}]   ;;  %s1545_s1 = inlined_call_operand.vmem [shape: f32[256,128], index: 1, kind: input, shape index: {}]   ;;  %s1546_s2 = inlined_call_operand.hbm [shape: f32[128,128], index: 2, kind: input, shape index: {}]   ;;  %s1547_s3 = inlined_call_operand.vmem [shape: f32[2,128,1], index: 3, kind: input, shape index: {}]   ;;  %s1548_s4 = inlined_call_operand.hbm [shape: f32[2,128,128], index: 4, kind: output, shape index: {}]  }
   0x1   :  { %1557 = sst [smem:[#allocation16_spill]] %s1547_s3 }
   0x2   :  { %1558 = sst [smem:[#allocation17_spill]] %s1548_s4 }
   0x3   :  { %9 = vsyncpa [#allocation3], 0 }
   0x4   :  { %11 = vsyncpa [#allocation3 + $0x1], 0 }
   0x5   :  { %12 = vsyncpa [#allocation6], 0 }
   0x6   :  { %14 = vsyncpa [#allocation6 + $0x1], 0 }
   0x7   :  { %15 = vsyncpa [#allocation4], 0 }
   0x8   :  { %17 = vsyncpa [#allocation4 + $0x1], 0  ;;  %s1134_s15 = smov 0   ;;  %s1136_s16 = smov 0  }
   0x9   :  { %s1138_s17 = smov 0   ;;  %s1140_s18 = smov 0  }
   0xa   :  { %s1142_s19 = smov 0   ;;  %s1144_s20 = smov 0  }
   0xb   :  { %s1146_s21 = smov 0   ;;  %s1148_s22 = smov 0  }
   0xc   :  { %s1150_s23 = smov 0   ;;  %s1152_s24 = smov 0  }
   0xd   :  { %s1154_s25 = smov 0  }
   0xe LB: > { %1559 = sst [smem:[#allocation11_spill]] %s1069_s18  ;;  %s686_s26 = sadd.s32 4294967295, %s1097_s25   ;;  %s1097_s25 = sphi %s1154_s25, %s23_s25   ;;  %s1093_s24 = sphi %s1152_s24, %s1592_s24   ;;  %s1089_s23 = sphi %s1150_s23, %s1591_s23   ;;  %s1085_s22 = sphi %s1148_s22, %s1590_s22   ;;  %s1081_s21 = sphi %s1146_s21, %s1589_s21   ;;  %s1077_s20 = sphi %s1144_s20, %s1588_s20   ;;  %s1073_s19 = sphi %s1142_s19, %s1587_s19   ;;  %s1069_s18 = sphi %s1140_s18, %s1586_s18   ;;  %s1065_s17 = sphi %s1138_s17, %s1585_s17   ;;  %s1061_s16 = sphi %s1136_s16, %s1584_s16   ;;  %s1057_s15 = sphi %s1134_s15, %s1583_s15  }
   0xf   : > { %s687_s27 = sadd.s32 4294967294, %s1097_s25   ;;  %s32_s28 = sadd.s32 1, %s1089_s23 }
  0x10   : > { %s35_s29 = sadd.s32 1, %s1093_s24  ;;  %p33_p0 = scmp.ge.s32.totalorder %s32_s28, 2 }
  0x11   : > { %s44_s30 = sadd.s32 1, %s1077_s20  ;;  %p51_p1 = scmp.ne.s32.totalorder %s1077_s20, %s1073_s19 }
  0x12   : > { %p1556_p2 = scmp.eq.s32.totalorder %s1097_s25, 0  ;;  %s1594_s28 = smov (%p33_p0, %s32_s28), 0 }
  0x13   : > { %1560 = sst [smem:[#allocation12_spill]] %s1594_s28  ;;  %s1596_s29 = smov (!%p33_p0, %s35_s29), %s1093_s24 }
  0x14   : > { %s39_s5 = ssub.s32 %s1089_s23, %s1594_s28  ;;  %p1204_p3 = por %p1556_p2, %p51_p1 }
  0x15   : > { %p37_p4 = scmp.ge.s32.totalorder %s1596_s29, 2  ;;  %p57_p5 = scmp.ne.s32.totalorder %s1073_s19, %s1069_s18 }
  0x16   : > { %p1210_p6 = scmp.eq.s32.totalorder %s686_s26, 0  ;;  %p158_p7 = scmp.eq.s32.totalorder %s686_s26, 3 }
  0x17   : > { %s1598_s29 = smov (%p37_p4, %s1596_s29), 0  ;;  %p164_p10 = scmp.eq.s32.totalorder %s687_s27, 3 }
  0x18   : > { %1563 = sst [smem:[#allocation13_spill]] %s1598_s29  ;;  %p1218_p8 = por %p1210_p6, %p57_p5 }
  0x19   : > { %p1222_p9 = por %p158_p7, %p51_p1  ;;  %s1228_s10 = ssub.s32 %s1093_s24, %s1598_s29 }
  0x1a   : > { %s41_s11 = sor.u32 %s1228_s10, %s39_s5  ;;  %p1232_p13 = por %p164_p10, %p57_p5 }
  0x1b   : > { %s1565_s9 = scalar_select %p1222_p9, 1, 0 }
  0x1c   : > { %p42_p12 = scmp.eq.s32.totalorder %s41_s11, 0  ;;  %p818_p0 = scmp.lt.s32.totalorder %s1097_s25, 4 }
  0x1d   : > { %1566 = sst [smem:[#allocation14_spill]] %s1565_s9  ;;  %s187_s14 = sand.u32 1, %s1077_s20  }
  0x1e   : > { %s1567_s12 = scalar_select %p1232_p13, 1, 0 }
  0x1f   : > { %s1238_s13 = scalar_select %p42_p12, %s1077_s20, %s44_s30  }
  0x20   : > { %1568 = sst [smem:[#allocation15_spill]] %s1567_s12  ;;  %s711_s26 = sshll.u32 %s1093_s24, 4 }
  0x21   : > { %s690_s29 = sshll.u32 %s187_s14, 7  ;;  %s693_s28 = sshll.u32 %s1089_s23, 5 }
  0x22   : > { %s198_s18 = sadd.s32 %s711_s26, %s693_s28  ;;  %s191_s4 = scalar_lea.vmem [#allocation2], %s690_s29 }
  0x23   : > { %s201_s27 = sshll.u32 %s191_s4, 4  ;;  %s694_s5 = sshll.u32 %s198_s18, 7  ;;  %s202_s27 = int_to_ptr.vmem [resolvable:$true] %s201_s27 }
  0x24   : > { %s200_s11 = scalar_lea.hbm %s1544_s0, %s694_s5  ;;  %p1250_p1 = pnand %p818_p0, %p1204_p3 }
  0x25   : > { %p698_p4 = scmp.ge.s32.totalorder %s1097_s25, 1  ;;  %s188_s30 = scalar_lea.sflag [#allocation3], %s187_s14 }
  0x26   : > { %p919_p5 = pneg %p1250_p1  ;;  %s930_s28 = scalar_lea.vmem %s202_s27, 2048 }
  0x27   : > { %p931_p7 = scmp.ne.s32.totalorder %s202_s27, %s930_s28  ;;  %s1099_s4 = smov [#allocation2]  }
  0x28   : > { %s935_s18 = sshll.u32 %s1099_s4, 4  ;;  %s936_s18 = int_to_ptr.vmem [resolvable:$false] %s935_s18 }
  0x29   : > { %p933_p10 = pnand %p931_p7, %p919_p5  ;;  %s937_s3 = scalar_lea.vmem %s936_s18, 4096 }
  0x2a   : > { %p938_p2 = scmp.lt.s32.totalorder %s202_s27, %s936_s18  ;;  %p939_p11 = scmp.lt.s32.totalorder %s937_s3, %s930_s28 }
  0x2b   : > { %p934_p12 = pneg %p933_p10 }
  0x2c   : > { %p940_p13 = por %p939_p11, %p938_p2 }
  0x2e   : > { %p941_p3 = pnand %p940_p13, %p934_p12 }
  0x30   : > { %944 = shalt.err (!%p941_p3)
}
  0x31   : > { %s1100_s29 = smov 256   ;;  %s1101_s6 = smov 16  }
  0x32   : > { %810 = dma.hbm_to_vmem [thread:$0]  (!%p1250_p1), %s200_s11, 2048, %s202_s27, %s188_s30, %s1100_s29, %s1100_s29, %s1101_s6  }
  0x33   : > { %p243_p2 = scmp.lt.s32.totalorder %s1097_s25, 5  ;;  %s91_s14 = sadd.s32 1, %s1065_s17 }
  0x34   : > { %p98_p13 = scmp.ne.s32.totalorder %s1065_s17, %s1061_s16  ;;  %p1571_p5 = scmp.eq.s32.totalorder %s1228_s10, 0 }
  0x35   : > { %p1262_p11 = pnand %p698_p4, %p243_p2  ;;  %p1572_p7 = scmp.eq.s32.totalorder %s1097_s25, 0 }
  0x36   : > { %s1272_s26 = scalar_select %p1571_p5, %s1065_s17, %s91_s14  }
  0x37   : > { %p100_p10 = por %p98_p13, %p1572_p7  ;;  %p104_p12 = scmp.ne.s32.totalorder %s1061_s16, %s1057_s15 }
  0x38   : > { %s211_s5 = sand.u32 1, %s1065_s17   ;;  %s712_s28 = sshll.u32 %s1093_s24, 10 }
  0x39   : > { %p1282_p3 = por %p104_p12, %p1210_p6  ;;  %s695_s27 = sshll.u32 %s211_s5, 6 }
  0x3a   : > { %s221_s4 = scalar_lea.hbm %s1546_s2, %s712_s28  ;;  %p1291_p1 = pnand %p818_p0, %p100_p10 }
  0x3b   : > { %s215_s18 = scalar_lea.vmem [#allocation5], %s695_s27  ;;  %s212_s3 = scalar_lea.sflag [#allocation6], %s211_s5 }
  0x3c   : > { %s222_s15 = sshll.u32 %s215_s18, 4  ;;  %p947_p6 = pneg %p1291_p1  ;;  %s223_s15 = int_to_ptr.vmem [resolvable:$true] %s222_s15 }
  0x3d   : > { %s958_s7 = scalar_lea.vmem %s223_s15, 1024  ;;  %s1102_s29 = smov [#allocation5]  }
  0x3e   : > { %p959_p4 = scmp.ne.s32.totalorder %s223_s15, %s958_s7  ;;  %s963_s6 = sshll.u32 %s1102_s29, 4  ;;  %s964_s6 = int_to_ptr.vmem [resolvable:$false] %s963_s6 }
  0x3f   : > { %s965_s14 = scalar_lea.vmem %s964_s6, 2048  ;;  %p966_p5 = scmp.lt.s32.totalorder %s223_s15, %s964_s6 }
  0x40   : > { %p961_p2 = pnand %p959_p4, %p947_p6  ;;  %p967_p0 = scmp.lt.s32.totalorder %s965_s14, %s958_s7 }
  0x42   : > { %p962_p13 = pneg %p961_p2  ;;  %p968_p7 = por %p967_p0, %p966_p5 }
  0x44   : > { %p969_p10 = pnand %p968_p7, %p962_p13 }
  0x46   : > { %972 = shalt.err (!%p969_p10)
}
  0x47   : > { %s1103_s28 = smov 128   ;;  %s1104_s27 = smov 8  }
  0x48   : > { %813 = dma.hbm_to_vmem [thread:$0]  (!%p1291_p1), %s221_s4, 1024, %s223_s15, %s212_s3, %s1103_s28, %s1103_s28, %s1104_s27  }
  0x49   : > { %247 = sbr.rel (%p1262_p11) target bundleno = 345 (0x159), region = 36  ;;  %s1302_s5 = sand.u32 (!%p1262_p11), 1, %s1073_s19  }
  0x4a   : > { %s699_s11 = sshll.u32 (!%p1262_p11), %s1302_s5, 7  ;;  %s250_s30 = scalar_lea.sflag (!%p1262_p11), [#allocation3], %s1302_s5 }
  0x4b   : > { %s1306_s18 = scalar_lea.vmem (!%p1262_p11), [#allocation2], %s699_s11 }
  0x4e   : > { %1044 = dma.done.wait (%p1218_p8), %s250_s30, 2048  }
  0x4f   : > { %1046 = vsyncadd (%p1218_p8), %s250_s30, 4294965248  ;;  %s258_s4 = sand.u32 1, %s1061_s16  }
  0x50   : > { %s700_s9 = sshll.u32 %s258_s4, 6  ;;  %s259_s10 = scalar_lea.sflag [#allocation6], %s258_s4 }
  0x51   : > { %s1313_s15 = scalar_lea.vmem [#allocation5], %s700_s9 }
  0x52   : > { %1048 = dma.done.wait (%p1282_p3), %s259_s10, 1024  }
  0x53   : > { %1050 = vsyncadd (%p1282_p3), %s259_s10, 4294966272  ;;  %v1105_v0 = vmov 0   ;;  %v361_v1 = vld [vmem:[%s1545_s1 + $0xf8] sm:$0xff]  ;;  %v360_v3 = vld [vmem:[%s1545_s1 + $0xf0] sm:$0xff]  ;;  %s1368_s6 = sshll.u32 %s1085_s22, 3  ;;  %p304_p8 = scmp.lt.s32.totalorder %s1081_s21, 1 }
  0x54   : > { %916 = vset.pattern.permute.xlu1 %v1105_v0  ;;  %915 = vset.pattern.permute.xlu0 %v1105_v0  ;;  %v345_v2 = vld [vmem:[%s1545_s1 + $0x78] sm:$0xff]  ;;  %v344_v4 = vld [vmem:[%s1545_s1 + $0x70] sm:$0xff]  ;;  %v359_v5 = vld [vmem:[%s1545_s1 + $0xe8] sm:$0xff]  ;;  %p306_p11 = scmp.lt.s32.totalorder %s1368_s6, 15  ;;  %s707_s29 = sshll.u32 %s1081_s21, 4 }
  0x55   : > { %713 = vmatprep.subr.mxu0 %v361_v1  ;;  %769 = vmatprep.subr.mxu1 %v361_v1  ;;  %v343_v6 = vld [vmem:[%s1545_s1 + $0x68] sm:$0xff]  ;;  %v358_v7 = vld [vmem:[%s1545_s1 + $0xe0] sm:$0xff]  ;;  %v357_v9 = vld [vmem:[%s1545_s1 + $0xd8] sm:$0xff]  ;;  %s305_s9 = scalar_select %p304_p8, %s1081_s21, 1 }
  0x56   : > { %714 = vmatpush3.msra.mxu0 %v345_v2  ;;  %785 = vmatpush3.msra.mxu1 %v345_v2  ;;  %v342_v8 = vld [vmem:[%s1545_s1 + $0x60] sm:$0xff]  ;;  %v341_v10 = vld [vmem:[%s1545_s1 + $0x58] sm:$0xff]  ;;  %v356_v11 = vld [vmem:[%s1545_s1 + $0xd0] sm:$0xff]  ;;  %s307_s28 = scalar_select %p306_p11, %s1368_s6, 15 }
  0x57   : > { %715 = vmatprep.subr.mxu0 %v360_v3  ;;  %770 = vmatprep.subr.mxu1 %v360_v3  ;;  %v340_v12 = vld [vmem:[%s1545_s1 + $0x50] sm:$0xff]  ;;  %v355_v13 = vld [vmem:[%s1545_s1 + $0xc8] sm:$0xff]  ;;  %v354_v15 = vld [vmem:[%s1545_s1 + $0xc0] sm:$0xff]  ;;  %s703_s11 = sshll.u32 %s305_s9, 4  ;;  %s552_s21 = sadd.s32 %s707_s29, %s1368_s6 }
  0x58   : > { %716 = vmatpush3.msra.mxu0 %v344_v4  ;;  %786 = vmatpush3.msra.mxu1 %v344_v4  ;;  %v339_v14 = vld [vmem:[%s1545_s1 + $0x48] sm:$0xff]  ;;  %v338_v16 = vld [vmem:[%s1545_s1 + $0x40] sm:$0xff]  ;;  %v353_v17 = vld [vmem:[%s1545_s1 + $0xb8] sm:$0xff]  ;;  %s309_s8 = sadd.s32 %s703_s11, %s307_s28  ;;  %s708_s12 = sshll.u32 %s552_s21, 7 }
  0x59   : > { %717 = vmatprep.subr.mxu0 %v359_v5  ;;  %771 = vmatprep.subr.mxu1 %v359_v5  ;;  %v337_v18 = vld [vmem:[%s1545_s1 + $0x38] sm:$0xff]  ;;  %v352_v19 = vld [vmem:[%s1545_s1 + $0xb0] sm:$0xff]  ;;  %v351_v21 = vld [vmem:[%s1545_s1 + $0xa8] sm:$0xff]  ;;  %s704_s28 = sshll.u32 %s309_s8, 3  ;;  %s1575_s8 = sld [smem:[#allocation16_spill]] }
  0x5a   : > { %718 = vmatpush3.msra.mxu0 %v343_v6  ;;  %787 = vmatpush3.msra.mxu1 %v343_v6  ;;  %v336_v20 = vld [vmem:[%s1545_s1 + $0x30] sm:$0xff]  ;;  %v335_v22 = vld [vmem:[%s1545_s1 + $0x28] sm:$0xff]  ;;  %v350_v23 = vld [vmem:[%s1545_s1 + $0xa0] sm:$0xff]  ;;  %s1577_s11 = sld [smem:[#allocation17_spill]]  ;;  %s1106_s10 = smov [#allocation7]  }
  0x5b   : > { %719 = vmatprep.subr.mxu0 %v358_v7  ;;  %772 = vmatprep.subr.mxu1 %v358_v7  ;;  %v334_v24 = vld [vmem:[%s1545_s1 + $0x20] sm:$0xff]  ;;  %v349_v25 = vld [vmem:[%s1545_s1 + $0x98] sm:$0xff]  ;;  %v348_v27 = vld [vmem:[%s1545_s1 + $0x90] sm:$0xff]  ;;  %s977_s3 = sshll.u32 %s1106_s10, 4  ;;  %s978_s3 = int_to_ptr.vmem [resolvable:$false] %s977_s3 }
  0x5c   : > { %720 = vmatpush3.msra.mxu0 %v342_v8  ;;  %788 = vmatpush3.msra.mxu1 %v342_v8  ;;  %v333_v26 = vld [vmem:[%s1545_s1 + $0x18] sm:$0xff]  ;;  %v332_v28 = vld [vmem:[%s1545_s1 + $0x10] sm:$0xff]  ;;  %v347_v29 = vld [vmem:[%s1545_s1 + $0x88] sm:$0xff]  ;;  %s979_s7 = scalar_lea.vmem %s978_s3, 2048 }
  0x5d   : > { %721 = vmatprep.subr.mxu0 %v357_v9  ;;  %773 = vmatprep.subr.mxu1 %v357_v9  ;;  %v331_v30 = vld [vmem:[%s1545_s1 + $0x8] sm:$0xff]  ;;  %v346_v31 = vld [vmem:[%s1545_s1 + $0x80] sm:$0xff]  ;;  %v317_v37 = vld [vmem:[%s1306_s18 + $0x18] sm:$0xff] }
  0x5e   : > { %722 = vmatpush3.msra.mxu0 %v341_v10  ;;  %789 = vmatpush3.msra.mxu1 %v341_v10  ;;  %v330_v32 = vld [vmem:[%s1545_s1] sm:$0xff]  ;;  %v315_v33 = vld [vmem:[%s1306_s18 + $0x8] sm:$0xff]  ;;  %v325_v38 = vld [vmem:[%s1306_s18 + $0x58] sm:$0xff] }
  0x5f   : > { %723 = vmatprep.subr.mxu0 %v356_v11  ;;  %774 = vmatprep.subr.mxu1 %v356_v11  ;;  %v323_v34 = vld [vmem:[%s1306_s18 + $0x48] sm:$0xff]  ;;  %s1431_s9 = scalar_lea.vmem %s1575_s8, %s704_s28  ;;  %v314_v35 = vld [vmem:[%s1306_s18] sm:$0xff]  ;;  %v316_v41 = vld [vmem:[%s1306_s18 + $0x10] sm:$0xff] }
  0x60   : > { %724 = vmatpush3.msra.mxu0 %v340_v12  ;;  %790 = vmatpush3.msra.mxu1 %v340_v12  ;;  %v322_v36 = vld [vmem:[%s1306_s18 + $0x40] sm:$0xff]  ;;  %v477_v39 = vld [vmem:[%s1431_s9 + $0x10] sm:$0xff]  ;;  %v319_v43 = vld [vmem:[%s1306_s18 + $0x28] sm:$0xff]  ;;  %s1476_s22 = scalar_lea.hbm %s1577_s11, %s708_s12 }
  0x61   : > { %725 = vmatprep.subr.mxu0 %v355_v13  ;;  %775 = vmatprep.subr.mxu1 %v355_v13  ;;  %v475_v40 = vld [vmem:[%s1431_s9] sm:$0xff]  ;;  %v324_v42 = vld [vmem:[%s1306_s18 + $0x50] sm:$0xff]  ;;  %v327_v44 = vld [vmem:[%s1306_s18 + $0x68] sm:$0xff] }
  0x62   : > { %726 = vmatpush3.msra.mxu0 %v339_v14  ;;  %791 = vmatpush3.msra.mxu1 %v339_v14  ;;  %v478_v45 = vld [vmem:[%s1431_s9 + $0x18] sm:$0xff]  ;;  %v476_v46 = vld [vmem:[%s1431_s9 + $0x8] sm:$0xff]  ;;  %v318_v47 = vld [vmem:[%s1306_s18 + $0x20] sm:$0xff] }
  0x63   : > { %727 = vmatprep.subr.mxu0 %v354_v15  ;;  %776 = vmatprep.subr.mxu1 %v354_v15  ;;  %v326_v48 = vld [vmem:[%s1306_s18 + $0x60] sm:$0xff]  ;;  %v321_v49 = vld [vmem:[%s1306_s18 + $0x38] sm:$0xff]  ;;  %v480_v51 = vld [vmem:[%s1431_s9 + $0x28] sm:$0xff] }
  0x64   : > { %728 = vmatpush3.msra.mxu0 %v338_v16  ;;  %792 = vmatpush3.msra.mxu1 %v338_v16  ;;  %v329_v50 = vld [vmem:[%s1306_s18 + $0x78] sm:$0xff]  ;;  %v479_v52 = vld [vmem:[%s1431_s9 + $0x20] sm:$0xff]  ;;  %v320_v53 = vld [vmem:[%s1306_s18 + $0x30] sm:$0xff] }
  0x65   : > { %729 = vmatprep.subr.mxu0 %v353_v17  ;;  %777 = vmatprep.subr.mxu1 %v353_v17  ;;  %v328_v54 = vld [vmem:[%s1306_s18 + $0x70] sm:$0xff]  ;;  %v482_v55 = vld [vmem:[%s1431_s9 + $0x38] sm:$0xff]  ;;  %v362_v62 = vld [vmem:[%s1313_s15] sm:$0xff]  ;;  %s701_s18 = sshll.u32 %s1302_s5, 6 }
  0x66   : > { %730 = vmatpush3.msra.mxu0 %v337_v18  ;;  %793 = vmatpush3.msra.mxu1 %v337_v18  ;;  %v481_v56 = vld [vmem:[%s1431_s9 + $0x30] sm:$0xff]  ;;  %v366_v0 = vld [vmem:[%s1313_s15 + $0x20] sm:$0xff]  ;;  %v363_v10 = vld [vmem:[%s1313_s15 + $0x8] sm:$0xff]  ;;  %s1461_s14 = scalar_lea.vmem [#allocation7], %s701_s18 }
  0x67   : > { %731 = vmatprep.subr.mxu0 %v352_v19  ;;  %778 = vmatprep.subr.mxu1 %v352_v19  ;;  %v367_v12 = vld [vmem:[%s1313_s15 + $0x28] sm:$0xff]  ;;  %s555_s27 = sshll.u32 %s1461_s14, 4  ;;  %s1480_s27 = int_to_ptr.vmem [resolvable:$true] %s555_s27 }
  0x68   : > { %732 = vmatpush3.msra.mxu0 %v336_v20  ;;  %794 = vmatpush3.msra.mxu1 %v336_v20  ;;  %s973_s4 = scalar_lea.vmem %s1480_s27, 1024  ;;  %p980_p6 = scmp.lt.s32.totalorder %s1480_s27, %s978_s3 }
  0x69   : > { %733 = vmatprep.subr.mxu0 %v351_v21  ;;  %779 = vmatprep.subr.mxu1 %v351_v21  ;;  %p974_p12 = scmp.ne.s32.totalorder %s1480_s27, %s973_s4  ;;  %p981_p4 = scmp.lt.s32.totalorder %s979_s7, %s973_s4 }
  0x6a   : > { %734 = vmatpush3.msra.mxu0 %v335_v22  ;;  %795 = vmatpush3.msra.mxu1 %v335_v22 }
  0x6b   : > { %735 = vmatprep.subr.mxu0 %v350_v23  ;;  %780 = vmatprep.subr.mxu1 %v350_v23  ;;  %v364_v23 = vld [vmem:[%s1313_s15 + $0x10] sm:$0xff]  ;;  %p975_p3 = pnand %p974_p12, %p1222_p9  ;;  %p982_p2 = por %p981_p4, %p980_p6 }
  0x6c   : > { %736 = vmatpush3.msra.mxu0 %v334_v24  ;;  %796 = vmatpush3.msra.mxu1 %v334_v24 }
  0x6d   : > { %737 = vmatprep.subr.mxu0 %v349_v25  ;;  %781 = vmatprep.subr.mxu1 %v349_v25  ;;  %v368_v25 = vld [vmem:[%s1313_s15 + $0x30] sm:$0xff]  ;;  %p976_p1 = pneg %p975_p3 }
  0x6e   : > { %738 = vmatpush3.msra.mxu0 %v333_v26  ;;  %797 = vmatpush3.msra.mxu1 %v333_v26 }
  0x6f   : > { %739 = vmatprep.subr.mxu0 %v348_v27  ;;  %782 = vmatprep.subr.mxu1 %v348_v27  ;;  %p983_p13 = pnand %p982_p2, %p976_p1 }
  0x70   : > { %740 = vmatpush3.msra.mxu0 %v332_v28  ;;  %798 = vmatpush3.msra.mxu1 %v332_v28 }
  0x71   : > { %741 = vmatprep.subr.mxu0 %v347_v29  ;;  %783 = vmatprep.subr.mxu1 %v347_v29 }
  0x72   : > { %742 = vmatpush3.msra.mxu0 %v331_v30  ;;  %799 = vmatpush3.msra.mxu1 %v331_v30 }
  0x73   : > { %743 = vmatprep.subr.mxu0 %v346_v31  ;;  %784 = vmatprep.subr.mxu1 %v346_v31 }
  0x74   : > { %744 = vmatpush3.msra.mxu0 %v330_v32  ;;  %800 = vmatpush3.msra.mxu1 %v330_v32 }
  0x75   : > { %434 = vmatprep.mubr.f32.mxu0 %v315_v33  ;;  %454 = vmatprep.mubr.f32.mxu1 %v323_v34 }
  0x76   : > { %435 = vmatmul.mubr.f32.vlgmr.msra.gmra.mxu0 %v314_v35  ;;  %455 = vmatmul.mubr.f32.vlgmr.msra.gmra.mxu1 %v322_v36  ;;  %v365_v36 = vld [vmem:[%s1313_s15 + $0x18] sm:$0xff] }
  0x77   : > { %439 = vmatprep.mubr.f32.mxu0 %v317_v37  ;;  %459 = vmatprep.mubr.f32.mxu1 %v325_v38  ;;  %v369_v38 = vld [vmem:[%s1313_s15 + $0x38] sm:$0xff]  ;;  %s540_s15 = scalar_lea.sflag [#allocation4], %s1302_s5 }
  0x78   : > { %495 = vperm.xlu1 %916, %v477_v39   ;;  %485 = vperm.xlu0 %915, %v475_v40  }
  0x7a   : > { %440 = vmatmul.mubr.f32.gmra.mxu0 %v316_v41  ;;  %460 = vmatmul.mubr.f32.gmra.mxu1 %v324_v42 }
  0x7b   : > { %444 = vmatprep.mubr.f32.mxu0 %v319_v43  ;;  %464 = vmatprep.mubr.f32.mxu1 %v327_v44 }
  0x7c   : > { %500 = vperm.xlu1 %916, %v478_v45   ;;  %490 = vperm.xlu0 %915, %v476_v46  }
  0x7e   : > { %445 = vmatmul.mubr.f32.gmra.mxu0 %v318_v47  ;;  %465 = vmatmul.mubr.f32.gmra.mxu1 %v326_v48 }
  0x7f   : > { %449 = vmatprep.mubr.f32.mxu0 %v321_v49  ;;  %469 = vmatprep.mubr.f32.mxu1 %v329_v50 }
  0x80   : > { %510 = vperm.xlu1 %916, %v480_v51   ;;  %505 = vperm.xlu0 %915, %v479_v52  }
  0x82   : > { %450 = vmatmul.mubr.f32.gmra.mxu0 %v320_v53  ;;  %470 = vmatmul.mubr.f32.gmra.mxu1 %v328_v54 }
  0x84   : > { %520 = vperm.xlu1 %916, %v482_v55   ;;  %515 = vperm.xlu0 %915, %v481_v56  }
  0xf3   : > { %v486_v57 = vpop.permute.xlu0 %485  ;;  %v496_v58 = vpop.permute.xlu1 %495 }
  0xf7   : > { %v491_v59 = vpop.permute.xlu0 %490  ;;  %v501_v2 = vpop.permute.xlu1 %500 }
  0xfb   : > { %v506_v7 = vpop.permute.xlu0 %505  ;;  %v511_v20 = vpop.permute.xlu1 %510 }
  0xff   : > { %v516_v33 = vpop.permute.xlu0 %515  ;;  %v521_v46 = vpop.permute.xlu1 %520 }
 0x136   : > { %v745_v60 = vpop.f32.mrf.mxu0  ;;  %v757_v61 = vpop.f32.mrf.mxu1 }
 0x138   : > { %v746_v63 = vpop.f32.mrf.mxu0  ;;  %v758_v1 = vpop.f32.mrf.mxu1 }
 0x139   : > { %v747_v3 = vadd.f32 %v746_v63, %v745_v60  ;;  %v759_v4 = vadd.f32 %v758_v1, %v757_v61 }
 0x13a   : > { %v748_v5 = vpop.f32.mrf.mxu0  ;;  %v760_v6 = vpop.f32.mrf.mxu1 }
 0x13b   : > { %v437_v8 = vadd.f32 %v747_v3, %v362_v62  ;;  %v457_v9 = vadd.f32 %v759_v4, %v366_v0 }
 0x13c   : > { %v749_v11 = vpop.f32.mrf.mxu0  ;;  %v761_v13 = vpop.f32.mrf.mxu1 }
 0x13d   : > { %v523_v14 = vmul.f32 %v486_v57, %v437_v8  ;;  %v527_v15 = vmul.f32 %v506_v7, %v457_v9  ;;  %v750_v16 = vadd.f32 %v749_v11, %v748_v5  ;;  %v762_v17 = vadd.f32 %v761_v13, %v760_v6 }
 0x13e   : > { %v751_v18 = vpop.f32.mrf.mxu0  ;;  %v763_v19 = vpop.f32.mrf.mxu1 }
 0x13f   : > { %531 = vst [vmem:[%s1461_s14] sm:$0xff] %v523_v14  ;;  %535 = vst [vmem:[%s1461_s14 + $0x20] sm:$0xff] %v527_v15  ;;  %v442_v21 = vadd.f32 %v750_v16, %v363_v10  ;;  %v462_v22 = vadd.f32 %v762_v17, %v367_v12 }
 0x140   : > { %v752_v24 = vpop.f32.mrf.mxu0  ;;  %v764_v26 = vpop.f32.mrf.mxu1 }
 0x141   : > { %v524_v27 = vmul.f32 %v491_v59, %v442_v21  ;;  %v528_v28 = vmul.f32 %v511_v20, %v462_v22  ;;  %v753_v29 = vadd.f32 %v752_v24, %v751_v18  ;;  %v765_v30 = vadd.f32 %v764_v26, %v763_v19 }
 0x142   : > { %v754_v31 = vpop.f32.mrf.mxu0  ;;  %v766_v32 = vpop.f32.mrf.mxu1 }
 0x143   : > { %532 = vst [vmem:[%s1461_s14 + $0x8] sm:$0xff] %v524_v27  ;;  %536 = vst [vmem:[%s1461_s14 + $0x28] sm:$0xff] %v528_v28  ;;  %v447_v34 = vadd.f32 %v753_v29, %v364_v23  ;;  %v467_v35 = vadd.f32 %v765_v30, %v368_v25 }
 0x144   : > { %v755_v37 = vpop.f32.mrf.mxu0  ;;  %v767_v39 = vpop.f32.mrf.mxu1 }
 0x145   : > { %v525_v40 = vmul.f32 %v496_v58, %v447_v34  ;;  %v529_v41 = vmul.f32 %v516_v33, %v467_v35  ;;  %v756_v42 = vadd.f32 %v755_v37, %v754_v31  ;;  %v768_v43 = vadd.f32 %v767_v39, %v766_v32 }
 0x147   : > { %533 = vst [vmem:[%s1461_s14 + $0x10] sm:$0xff] %v525_v40  ;;  %537 = vst [vmem:[%s1461_s14 + $0x30] sm:$0xff] %v529_v41  ;;  %v452_v44 = vadd.f32 %v756_v42, %v365_v36  ;;  %v472_v45 = vadd.f32 %v768_v43, %v369_v38 }
 0x149   : > { %v526_v47 = vmul.f32 %v501_v2, %v452_v44  ;;  %v530_v48 = vmul.f32 %v521_v46, %v472_v45 }
 0x14b   : > { %534 = vst [vmem:[%s1461_s14 + $0x18] sm:$0xff] %v526_v47  ;;  %538 = vst [vmem:[%s1461_s14 + $0x38] sm:$0xff] %v530_v48 }
 0x14c   : > { %986 = shalt.err (!%p983_p13)
}
 0x14d   : > { %s987_s8 = scalar_lea.hbm %s1476_s22, 1024  ;;  %s991_s29 = scalar_lea.hbm %s1577_s11, 4096 }
 0x14e   : > { %p988_p5 = scmp.ne.s32.totalorder %s1476_s22, %s987_s8  ;;  %p992_p10 = scmp.lt.s32.totalorder %s1476_s22, %s1577_s11 }
 0x14f   : > { %p993_p8 = scmp.lt.s32.totalorder %s991_s29, %s987_s8 }
 0x150   : > { %p989_p0 = pnand %p988_p5, %p1222_p9 }
 0x151   : > { %p994_p11 = por %p993_p8, %p992_p10 }
 0x152   : > { %p990_p7 = pneg %p989_p0 }
 0x154   : > { %p995_p12 = pnand %p994_p11, %p990_p7 }
 0x156   : > { %998 = shalt.err (!%p995_p12)
}
 0x157   : > { %s1107_s12 = smov 128   ;;  %s1108_s30 = smov 8  }
 0x158   : > { %805 = dma.vmem_to_hbm [thread:$0]  (%p1222_p9), %s1480_s27, 1024, %s1476_s22, %s540_s15, %s1107_s12, %s1107_s12, %s1108_s30  }
 0x159 PF: > { %s1578_s28 = sld [smem:[#allocation11_spill]]  ;;  %p819_p3 = scmp.ge.s32.totalorder %s1097_s25, 2 }
 0x15a   : > { %s1579_s4 = sld [smem:[#allocation15_spill]] }
 0x15f   : > { %s570_s10 = sand.u32 1, %s1578_s28  }
 0x160   : > { %p1580_p1 = scmp.ne.s32.totalorder %s1579_s4, 0  ;;  %s571_s3 = scalar_lea.sflag [#allocation4], %s570_s10 }
 0x162   : > { %p815_p6 = pnand %p819_p3, %p1580_p1 }
 0x164   : > { %p816_p4 = pneg %p815_p6 }
 0x166   : > { %1052 = dma.done.wait (%p816_p4), %s571_s3, 1024  }
 0x167   : > { %1054 = vsyncadd (%p816_p4), %s571_s3, 4294966272  ;;  %s23_s25 = sadd.s32 1, %s1097_s25   ;;  %s1581_s5 = sld [smem:[#allocation12_spill]] }
 0x168   : > { %p20_p2 = scmp.ge.s32.totalorder %s23_s25, 6   ;;  %s1582_s6 = sld [smem:[#allocation13_spill]] }
 0x169   : > { %s1583_s15 = smov %s1061_s16  ;;  %s1584_s16 = smov %s1065_s17 }
 0x16a   : > { %s1585_s17 = smov %s1272_s26  ;;  %s1586_s18 = smov %s1073_s19 }
 0x16b   : > { %s1587_s19 = smov %s1077_s20  ;;  %s1588_s20 = smov %s1238_s13 }
 0x16c   : > { %s1589_s21 = smov %s1089_s23  ;;  %s1590_s22 = smov %s1093_s24 }
 0x16d   : > { %s1591_s23 = smov %s1581_s5  ;;  %22 = sbr.rel (!%p20_p2) target bundleno = 14 (0xe), region = 97 }
 0x16e   : > { %s1592_s24 = smov %s1582_s6 }
 0x172   :  { %576 = vsyncpa [#allocation3], 1 }
 0x173   :  { %578 = vsyncpa [#allocation3 + $0x1], 1 }
 0x174   :  { %579 = vsyncpa [#allocation6], 1 }
 0x175   :  { %581 = vsyncpa [#allocation6 + $0x1], 1 }
 0x176   :  { %582 = vsyncpa [#allocation4], 1 }
 0x177   :  { %584 = vsyncpa [#allocation4 + $0x1], 1 }

</bundles_post_ra>
